<compile_context>
chip_gen: v6e
topology: v6e:2x2x1
jax: 0.10.0
libtpu: 0.0.40
codegen_flags: <defaults>
</compile_context>

<pallas_src>
import jax
import jax.numpy as jnp
from jax.experimental import pallas as pl
from jax.experimental.pallas import tpu as pltpu

HIDDEN1 = 250       # PyTorch model width
HIDDEN1_PAD = 256   # padded width (zero-padded; numerically identical)
HIDDEN2 = 64


def actor_kernel(obs_ref, w1_ref, b1_ref, w2_ref, b2_ref, w3_ref, b3_ref, out_ref):
    # bf16 MXU operands, f32 accumulation, f32 bias adds in the epilogue.
    x = obs_ref[...].astype(jnp.bfloat16)

    # fc1: Linear(dim_obs, 256[=250 padded]) + ReLU
    h1 = jnp.dot(x, w1_ref[...], preferred_element_type=jnp.float32) + b1_ref[...]
    h1 = jnp.maximum(h1, 0.0).astype(jnp.bfloat16)

    # fc2: Linear(256, 64) + ReLU
    h2 = jnp.dot(h1, w2_ref[...], preferred_element_type=jnp.float32) + b2_ref[...]
    h2 = jnp.maximum(h2, 0.0).astype(jnp.bfloat16)

    # fc3: Linear(64, dim_action) + Tanh
    y = jnp.dot(h2, w3_ref[...], preferred_element_type=jnp.float32) + b3_ref[...]
    out_ref[...] = jnp.tanh(y).astype(out_ref.dtype)


def init_actor_params(key, dim_observation, dim_action):
    """PyTorch-style Linear init: U(-1/sqrt(fan_in), 1/sqrt(fan_in)). f32, unpadded."""
    ks = jax.random.split(key, 6)

    def linear(kw, kb, fan_in, fan_out):
        bound = 1.0 / jnp.sqrt(jnp.float32(fan_in))
        w = jax.random.uniform(kw, (fan_in, fan_out), jnp.float32, -bound, bound)
        b = jax.random.uniform(kb, (1, fan_out), jnp.float32, -bound, bound)
        return w, b

    w1, b1 = linear(ks[0], ks[1], dim_observation, HIDDEN1)
    w2, b2 = linear(ks[2], ks[3], HIDDEN1, HIDDEN2)
    w3, b3 = linear(ks[4], ks[5], HIDDEN2, dim_action)
    return (w1, b1, w2, b2, w3, b3)


def prepare_params(params):
    """Zero-pad hidden width 250 -> 256 and cast weights to bf16 (biases stay f32)."""
    w1, b1, w2, b2, w3, b3 = params
    pad = HIDDEN1_PAD - w1.shape[1]
    w1p = jnp.pad(w1, ((0, 0), (0, pad)))
    b1p = jnp.pad(b1, ((0, 0), (0, pad)))
    w2p = jnp.pad(w2, ((0, pad), (0, 0)))
    return (
        w1p.astype(jnp.bfloat16),
        b1p.astype(jnp.float32),
        w2p.astype(jnp.bfloat16),
        b2.astype(jnp.float32),
        w3.astype(jnp.bfloat16),
        b3.astype(jnp.float32),
    )


def actor_forward(obs, prepared_params, tile_b=512):
    """Fused forward. obs: (B, dim_observation) f32. Returns (B, dim_action) f32."""
    w1, b1, w2, b2, w3, b3 = prepared_params
    B, dim_obs = obs.shape
    dim_action = w3.shape[1]

    # Batch tile: whole (8-rounded) batch when small, else tile_b rows per step.
    b8 = ((B + 7) // 8) * 8
    tb = b8 if b8 <= tile_b else tile_b
    b_pad = ((B + tb - 1) // tb) * tb
    if b_pad != B:
        obs = jnp.pad(obs, ((0, b_pad - B), (0, 0)))

    grid = (b_pad // tb,)

    def resident(arr):
        # Weights / biases: full-array block, constant index -> DMA'd once, stay resident.
        return pl.BlockSpec(arr.shape, lambda i: (0, 0))

    out = pl.pallas_call(
        actor_kernel,
        out_shape=jax.ShapeDtypeStruct((b_pad, dim_action), jnp.float32),
        grid=grid,
        in_specs=[
            pl.BlockSpec((tb, dim_obs), lambda i: (i, 0)),  # obs: tiled along batch
            resident(w1), resident(b1),
            resident(w2), resident(b2),
            resident(w3), resident(b3),
        ],
        out_specs=pl.BlockSpec((tb, dim_action), lambda i: (i, 0)),
        compiler_params=pltpu.CompilerParams(
            dimension_semantics=("parallel",),
        ),
    )(obs, w1, b1, w2, b2, w3, b3)
    return out[:B]


def actor_reference(obs, params):
    """Pure-JAX f32 reference on the original (unpadded) parameters."""
    w1, b1, w2, b2, w3, b3 = params
    h1 = jnp.maximum(obs @ w1 + b1, 0.0)
    h2 = jnp.maximum(h1 @ w2 + b2, 0.0)
    return jnp.tanh(h2 @ w3 + b3)


if __name__ == "__main__":
    key = jax.random.PRNGKey(0)
    k_params, k_obs1, k_obs2 = jax.random.split(key, 3)

    dim_observation = 32
    dim_action = 8

    params = init_actor_params(k_params, dim_observation, dim_action)
    prepared = prepare_params(params)

    # Small batch (single grid step).
    obs_small = jax.random.normal(k_obs1, (8, dim_observation), jnp.float32)
    out_small = jax.block_until_ready(actor_forward(obs_small, prepared))
    ref_small = actor_reference(obs_small, params)
    assert out_small.shape == (8, dim_action)
    assert jnp.allclose(out_small, ref_small, atol=3e-2, rtol=3e-2)

    # Larger, non-tile-aligned batch (exercises grid + batch padding path).
    obs_big = jax.random.normal(k_obs2, (1040, dim_observation), jnp.float32)
    out_big = jax.block_until_ready(actor_forward(obs_big, prepared))
    ref_big = actor_reference(obs_big, params)
    assert out_big.shape == (1040, dim_action)
    assert jnp.allclose(out_big, ref_big, atol=3e-2, rtol=3e-2)

    print("KERNEL_OK")
</pallas_src>

<mosaic_0001>
module attributes {stable_mosaic.version = 11 : i64} {
  func.func @actor_kernel(%arg0: i32, %arg1: memref<8x32xf32, #tpu.memory_space<vmem>>, %arg2: memref<32x256xbf16, #tpu.memory_space<vmem>>, %arg3: memref<1x256xf32, #tpu.memory_space<vmem>>, %arg4: memref<256x64xbf16, #tpu.memory_space<vmem>>, %arg5: memref<1x64xf32, #tpu.memory_space<vmem>>, %arg6: memref<64x8xbf16, #tpu.memory_space<vmem>>, %arg7: memref<1x8xf32, #tpu.memory_space<vmem>>, %arg8: memref<8x8xf32, #tpu.memory_space<vmem>>) attributes {dimension_semantics = [#tpu.dimension_semantics<parallel>], iteration_bounds = array<i64: 1>, scalar_prefetch = 0 : i64, scratch_operands = 0 : i64, tpu.core_type = #tpu.core_type<tc>, window_params = [{transform_indices = @transform_0, window_bounds = array<i64: 8, 32>}, {pipeline_mode = #tpu.pipeline_mode<synchronous>, transform_indices = @transform_1, window_bounds = array<i64: 32, 256>}, {pipeline_mode = #tpu.pipeline_mode<synchronous>, transform_indices = @transform_2, window_bounds = array<i64: 1, 256>}, {pipeline_mode = #tpu.pipeline_mode<synchronous>, transform_indices = @transform_3, window_bounds = array<i64: 256, 64>}, {pipeline_mode = #tpu.pipeline_mode<synchronous>, transform_indices = @transform_4, window_bounds = array<i64: 1, 64>}, {pipeline_mode = #tpu.pipeline_mode<synchronous>, transform_indices = @transform_5, window_bounds = array<i64: 64, 8>}, {pipeline_mode = #tpu.pipeline_mode<synchronous>, transform_indices = @transform_6, window_bounds = array<i64: 1, 8>}, {transform_indices = @transform_7, window_bounds = array<i64: 8, 8>}]} {
    %c0 = arith.constant 0 : index
    %c0_0 = arith.constant 0 : index
    %0 = vector.load %arg1[%c0, %c0_0] : memref<8x32xf32, #tpu.memory_space<vmem>>, vector<8x32xf32>
    %1 = arith.truncf %0 : vector<8x32xf32> to vector<8x32xbf16>
    %c0_1 = arith.constant 0 : index
    %c0_2 = arith.constant 0 : index
    %2 = vector.load %arg2[%c0_1, %c0_2] : memref<32x256xbf16, #tpu.memory_space<vmem>>, vector<32x256xbf16>
    %cst = arith.constant dense<0.000000e+00> : vector<8x256xf32>
    %3 = tpu.matmul %1, %2, %cst {dimension_numbers = #tpu.dot_dimension_numbers<[1], [0], [0], [1], [0, 0, 1, 1], [], []>} : vector<8x32xbf16>, vector<32x256xbf16>, vector<8x256xf32> -> vector<8x256xf32>
    %c0_3 = arith.constant 0 : index
    %c0_4 = arith.constant 0 : index
    %4 = vector.load %arg3[%c0_3, %c0_4] : memref<1x256xf32, #tpu.memory_space<vmem>>, vector<1x256xf32>
    %5 = vector.broadcast %4 : vector<1x256xf32> to vector<8x256xf32>
    %6 = arith.addf %3, %5 : vector<8x256xf32>
    %cst_5 = arith.constant 0.000000e+00 : f32
    %7 = vector.broadcast %cst_5 : f32 to vector<8x256xf32>
    %8 = arith.maximumf %6, %7 : vector<8x256xf32>
    %9 = arith.truncf %8 : vector<8x256xf32> to vector<8x256xbf16>
    %c0_6 = arith.constant 0 : index
    %c0_7 = arith.constant 0 : index
    %10 = vector.load %arg4[%c0_6, %c0_7] : memref<256x64xbf16, #tpu.memory_space<vmem>>, vector<256x64xbf16>
    %cst_8 = arith.constant dense<0.000000e+00> : vector<8x64xf32>
    %11 = tpu.matmul %9, %10, %cst_8 {dimension_numbers = #tpu.dot_dimension_numbers<[1], [0], [0], [1], [0, 0, 1, 1], [], []>} : vector<8x256xbf16>, vector<256x64xbf16>, vector<8x64xf32> -> vector<8x64xf32>
    %c0_9 = arith.constant 0 : index
    %c0_10 = arith.constant 0 : index
    %12 = vector.load %arg5[%c0_9, %c0_10] : memref<1x64xf32, #tpu.memory_space<vmem>>, vector<1x64xf32>
    %13 = vector.broadcast %12 : vector<1x64xf32> to vector<8x64xf32>
    %14 = arith.addf %11, %13 : vector<8x64xf32>
    %cst_11 = arith.constant 0.000000e+00 : f32
    %15 = vector.broadcast %cst_11 : f32 to vector<8x64xf32>
    %16 = arith.maximumf %14, %15 : vector<8x64xf32>
    %17 = arith.truncf %16 : vector<8x64xf32> to vector<8x64xbf16>
    %c0_12 = arith.constant 0 : index
    %c0_13 = arith.constant 0 : index
    %18 = vector.load %arg6[%c0_12, %c0_13] : memref<64x8xbf16, #tpu.memory_space<vmem>>, vector<64x8xbf16>
    %cst_14 = arith.constant dense<0.000000e+00> : vector<8x8xf32>
    %19 = tpu.matmul %17, %18, %cst_14 {dimension_numbers = #tpu.dot_dimension_numbers<[1], [0], [0], [1], [0, 0, 1, 1], [], []>} : vector<8x64xbf16>, vector<64x8xbf16>, vector<8x8xf32> -> vector<8x8xf32>
    %c0_15 = arith.constant 0 : index
    %c0_16 = arith.constant 0 : index
    %20 = vector.load %arg7[%c0_15, %c0_16] : memref<1x8xf32, #tpu.memory_space<vmem>>, vector<1x8xf32>
    %21 = vector.broadcast %20 : vector<1x8xf32> to vector<8x8xf32>
    %22 = arith.addf %19, %21 : vector<8x8xf32>
    %23 = math.tanh %22 : vector<8x8xf32>
    %c0_17 = arith.constant 0 : index
    %c0_18 = arith.constant 0 : index
    %24 = vector.load %arg8[%c0_17, %c0_18] : memref<8x8xf32, #tpu.memory_space<vmem>>, vector<8x8xf32>
    tpu.vector_store %arg8[%c0_17, %c0_18], %23 {strides = array<i32>} : memref<8x8xf32, #tpu.memory_space<vmem>>, vector<8x8xf32>,
    return
  }
  func.func @transform_0(%arg0: i32) -> (i32, i32) {
    %c0_i32 = arith.constant 0 : i32
    %c0_i32_0 = arith.constant 0 : i32
    return %arg0, %c0_i32 : i32, i32
  }
  func.func @transform_1(%arg0: i32) -> (i32, i32) {
    %c0_i32 = arith.constant 0 : i32
    %c0_i32_0 = arith.constant 0 : i32
    %c0_i32_1 = arith.constant 0 : i32
    return %c0_i32, %c0_i32_0 : i32, i32
  }
  func.func @transform_2(%arg0: i32) -> (i32, i32) {
    %c0_i32 = arith.constant 0 : i32
    %c0_i32_0 = arith.constant 0 : i32
    %c0_i32_1 = arith.constant 0 : i32
    return %c0_i32, %c0_i32_0 : i32, i32
  }
  func.func @transform_3(%arg0: i32) -> (i32, i32) {
    %c0_i32 = arith.constant 0 : i32
    %c0_i32_0 = arith.constant 0 : i32
    %c0_i32_1 = arith.constant 0 : i32
    return %c0_i32, %c0_i32_0 : i32, i32
  }
  func.func @transform_4(%arg0: i32) -> (i32, i32) {
    %c0_i32 = arith.constant 0 : i32
    %c0_i32_0 = arith.constant 0 : i32
    %c0_i32_1 = arith.constant 0 : i32
    return %c0_i32, %c0_i32_0 : i32, i32
  }
  func.func @transform_5(%arg0: i32) -> (i32, i32) {
    %c0_i32 = arith.constant 0 : i32
    %c0_i32_0 = arith.constant 0 : i32
    %c0_i32_1 = arith.constant 0 : i32
    return %c0_i32, %c0_i32_0 : i32, i32
  }
  func.func @transform_6(%arg0: i32) -> (i32, i32) {
    %c0_i32 = arith.constant 0 : i32
    %c0_i32_0 = arith.constant 0 : i32
    %c0_i32_1 = arith.constant 0 : i32
    return %c0_i32, %c0_i32_0 : i32, i32
  }
  func.func @transform_7(%arg0: i32) -> (i32, i32) {
    %c0_i32 = arith.constant 0 : i32
    %c0_i32_0 = arith.constant 0 : i32
    return %arg0, %c0_i32 : i32, i32
  }
}

</mosaic_0001>

<bundles_post_ra>
// kernel: tpu_custom_call.1
= control target key start
LH: loop header
LB: loop body
LE: loop exit
PB: predicated region body
PF: predicated region fallthrough
CT: control target
= control target key end

     0   :  { %v513_v2 = vmov 0   ;;  %vm66_vm0 = vcmask 261120   ;;  %s644_s0 = inlined_call_operand.vmem [shape: f32[8,32], index: 0, kind: input, shape index: {}]   ;;  %s645_s1 = inlined_call_operand.vmem [shape: bf16[32,256], index: 1, kind: input, shape index: {}]   ;;  %s646_s2 = inlined_call_operand.vmem [shape: f32[1,256], index: 2, kind: input, shape index: {}]   ;;  %s647_s3 = inlined_call_operand.vmem [shape: bf16[256,64], index: 3, kind: input, shape index: {}]   ;;  %s648_s4 = inlined_call_operand.vmem [shape: f32[1,64], index: 4, kind: input, shape index: {}]   ;;  %s649_s5 = inlined_call_operand.vmem [shape: bf16[64,8], index: 5, kind: input, shape index: {}]   ;;  %s650_s6 = inlined_call_operand.vmem [shape: f32[1,8], index: 6, kind: input, shape index: {}]   ;;  %s651_s7 = inlined_call_operand.hbm [shape: f32[8,8], index: 7, kind: output, shape index: {}]  }
   0x1   :  { %v463_v0 = vld [vmem:[%s645_s1 + $0x14] ss:$8 sps:$4 sm:$0xff]   ;;  %v465_v1 = vld [vmem:[%s645_s1 + $0x10] ss:$8 sps:$4 sm:$0xff]   ;;  %102 = vmatprep.mubr.bf16.mxu0 %v513_v2  ;;  %v466_v3 = vld [vmem:[%s645_s1 + $0x4] ss:$8 sps:$4 sm:$0xff]  }
   0x2   :  { %82 = vmatprep.subr.bf16.mxu0 %v463_v0  ;;  %v468_v4 = vld [vmem:[%s645_s1] ss:$8 sps:$4 sm:$0xff]   ;;  %v469_v6 = vld [vmem:[%s647_s3 + $0x78] sm:$0xff]   ;;  %v471_v8 = vld [vmem:[%s647_s3 + $0x70] sm:$0xff]  }
   0x3   :  { %v28_v5 = vld [vmem:[%s644_s0] sm:$0xff]  ;;  %83 = vmatpush1.bf16.msra.mxu0 %v465_v1  ;;  %v470_v7 = vld [vmem:[%s647_s3 + $0x38] sm:$0xff]   ;;  %420 = vmatprep.subr.bf16.mxu1 %v469_v6  ;;  %v472_v10 = vld [vmem:[%s647_s3 + $0x30] sm:$0xff]  }
   0x4   :  { %84 = vmatprep.subr.bf16.mxu0 %v466_v3  ;;  %v29_v9 = vpack.c.bf16 %v28_v5, %v28_v5  ;;  %421 = vmatpush3.bf16.msra.mxu1 %v470_v7  ;;  %v473_v11 = vld [vmem:[%s647_s3 + $0x68] sm:$0xff]   ;;  %v475_v13 = vld [vmem:[%s647_s3 + $0x60] sm:$0xff]   ;;  %v477_v15 = vld [vmem:[%s647_s3 + $0x58] sm:$0xff]  }
   0x5   :  { %422 = vmatprep.subr.bf16.mxu1 %v471_v8  ;;  %v474_v12 = vld [vmem:[%s647_s3 + $0x28] sm:$0xff]   ;;  %v476_v14 = vld [vmem:[%s647_s3 + $0x20] sm:$0xff]   ;;  %v478_v16 = vld [vmem:[%s647_s3 + $0x18] sm:$0xff]  }
   0x6   :  { %v479_v17 = vld [vmem:[%s647_s3 + $0x50] sm:$0xff]  }
   0x7   :  { %85 = vmatpush1.bf16.msra.mxu0 %v468_v4 }
   0x8   :  { %423 = vmatpush3.bf16.msra.mxu1 %v472_v10 }
   0x9   :  { %424 = vmatprep.subr.bf16.mxu1 %v473_v11 }
   0xa   :  { %396 = vmatmul.mubr.msk.bf16.vlgmr.msra.gmra.mxu0 %vm66_vm0, %v29_v9 }
   0xc   :  { %425 = vmatpush3.bf16.msra.mxu1 %v474_v12 }
   0xd   :  { %426 = vmatprep.subr.bf16.mxu1 %v475_v13 }
  0x10   :  { %427 = vmatpush3.bf16.msra.mxu1 %v476_v14 }
  0x11   :  { %428 = vmatprep.subr.bf16.mxu1 %v477_v15 }
  0x12   :  { %12 = vsyncpa [#allocation3], 0  ;;  %v480_v18 = vld [vmem:[%s647_s3 + $0x10] sm:$0xff]   ;;  %v481_v19 = vld [vmem:[%s647_s3 + $0x48] sm:$0xff]   ;;  %v514_v24 = vmov 0.0   ;;  %v36_v25 = vlaneseq  ;;  %vm515_vm1 = vmmov 0  }
  0x13   :  { %v482_v20 = vld [vmem:[%s647_s3 + $0x8] sm:$0xff]   ;;  %v483_v21 = vld [vmem:[%s647_s3 + $0x40] sm:$0xff]   ;;  %v485_v23 = vld [vmem:[%s649_s5 + $0x18] sm:$0xff]   ;;  %447 = vmatprep.subr.bf16.mxu0 %v514_v24  ;;  %455 = vmatprep.mubr.msk.bf16.mxu0 %vm515_vm1, %v514_v24  ;;  %vm331_vm2 = vcmask 523264   ;;  %vm376_vm3 = vcmask 64512  }
  0x14   :  { %429 = vmatpush3.bf16.msra.mxu1 %v478_v16  ;;  %v484_v22 = vld [vmem:[%s647_s3] sm:$0xff]   ;;  %448 = vmatpush3.bf16.msra.mxu0 %v485_v23  ;;  %v37_v26 = vshrl.u32 %v36_v25, 7  ;;  %v486_v42 = vld [vmem:[%s649_s5 + $0x10] sm:$0xff]   ;;  %v487_v43 = vld [vmem:[%s649_s5 + $0x8] sm:$0xff]  }
  0x15   :  { %430 = vmatprep.subr.bf16.mxu1 %v479_v17  ;;  %449 = vmatprep.subr.bf16.mxu0 %v514_v24  ;;  %v34_v28 = vld [vmem:[%s646_s2] sm:$0x3] }
  0x16   :  { %v38_v27 = vsub.s32 0, %v37_v26  ;;  %v42_v29 = vsub.s32 1, %v37_v26  ;;  %v488_v44 = vld [vmem:[%s649_s5] sm:$0xff]  }
  0x17   :  { %v397_v46 = vld [vmem:[%s648_s4] ss:$0 sm:$0xff]  ;;  %s516_s4 = smov [#allocation2]  }
  0x18   :  { %431 = vmatpush3.bf16.msra.mxu1 %v480_v18  ;;  %v39_v30 = vrot.slane %v34_v28, %v38_v27  ;;  %v43_v31 = vrot.slane %v34_v28, %v42_v29  ;;  %450 = vmatpush3.bf16.msra.mxu0 %v486_v42  ;;  %v414_v54 = vld [vmem:[%s650_s6] ss:$0 sm:$0xff]  ;;  %s384_s5 = sshll.u32 %s516_s4, 4  ;;  %s385_s5 = int_to_ptr.vmem [resolvable:$true] %s384_s5 }
  0x19   :  { %432 = vmatprep.subr.bf16.mxu1 %v481_v19  ;;  %451 = vmatprep.subr.bf16.mxu0 %v514_v24  ;;  %s491_s28 = scalar_lea.vmem %s385_s5, 128  ;;  %p496_p1 = scmp.lt.s32.totalorder %s385_s5, %s385_s5 }
  0x1a   :  { %p492_p0 = scmp.ne.s32.totalorder %s385_s5, %s491_s28  ;;  %p497_p2 = scmp.lt.s32.totalorder %s491_s28, %s491_s28 }
  0x1c   :  { %433 = vmatpush3.bf16.msra.mxu1 %v482_v20  ;;  %452 = vmatpush3.bf16.msra.mxu0 %v487_v43  ;;  %p498_p3 = por %p497_p2, %p496_p1 }
  0x1d   :  { %434 = vmatprep.subr.bf16.mxu1 %v483_v21  ;;  %453 = vmatprep.subr.bf16.mxu0 %v514_v24 }
  0x1e   :  { %p499_p4 = pnand %p498_p3, %p492_p0 }
  0x20   :  { %435 = vmatpush3.bf16.msra.mxu1 %v484_v22  ;;  %454 = vmatpush3.bf16.msra.mxu0 %v488_v44 }
  0xca   :  { %v104_v32 = vpop.f32.mrf.mxu0 }
  0xcb   :  { %v105_v33 = vadd.f32 %v104_v32, %v39_v30 }
  0xcc   :  { %v106_v34 = vpop.f32.mrf.mxu0 }
  0xcd   :  { %v107_v35 = vadd.f32 %v106_v34, %v43_v31  ;;  %v111_v36 = vmax.f32 %v105_v33, 0.0 }
  0xce   :  { %v108_v37 = vpop.f32.mrf.mxu0 }
  0xcf   :  { %v112_v38 = vmax.f32 %v107_v35, 0.0  ;;  %v113_v41 = vpack.c.bf16 %v111_v36, %v111_v36 }
  0xd0   :  { %v109_v39 = vpop.f32.mrf.mxu0 }
  0xd1   :  { %v114_v40 = vpack.c.bf16 %v112_v38, %v112_v38 }
  0xd3   :  { %282 = vmatprep.mubr.bf16.mxu1 %v114_v40 }
  0xd4   :  { %283 = vmatmul.mubr.bf16.vlgmr.msra.gmra.mxu1 %v113_v41 }
 0x194   :  { %v436_v45 = vpop.f32.mrf.mxu1 }
 0x196   :  { %v437_v47 = vpop.f32.mrf.mxu1 }
 0x197   :  { %v438_v48 = vadd.f32 %v437_v47, %v436_v45 }
 0x198   :  { %v439_v49 = vpop.f32.mrf.mxu1 }
 0x199   :  { %v285_v50 = vadd.f32 %v438_v48, %v397_v46 }
 0x19a   :  { %v440_v51 = vpop.f32.mrf.mxu1 }
 0x19b   :  { %v290_v52 = vmax.f32 %v285_v50, 0.0 }
 0x19d   :  { %v291_v53 = vpack.c.bf16 %v290_v52, %v290_v52 }
 0x19f   :  { %456 = vmatmul.mubr.msk.bf16.vlgmr.msra.gmra.mxu0 %vm331_vm2, %v291_v53 }
 0x25f   :  { %v369_v55 = vpop.f32.mrf.mxu0 }
 0x260   :  { %v370_v56 = vadd.f32 %v414_v54, %v369_v55 }
 0x261   :  { %v457_v57 = vpop.f32.mrf.mxu0 }
 0x262   :  { %489 = vtanh.f32 %v370_v56 }
 0x263   :  { %v372_v58 = vpop.f32.mrf.mxu0 }
 0x265   :  { %v458_v59 = vpop.f32.mrf.mxu0 }
 0x26f   :  { %v490_v60 = vpop.eup %489 }
 0x270   :  { %377 = vst.msk [vmem:[#allocation2] sm:$0xff] %vm376_vm3, %v490_v60 }
 0x271   :  { %502 = shalt.err (!%p499_p4)
}
 0x272   :  { %387 = dma.vmem_to_hbm [thread:$0]  %s385_s5, 128, %s651_s7, [#allocation3]  }
 0x273   :  { %511 = dma.done.wait [#allocation3], 128  }
 0x274   :  { %512 = vsyncadd [#allocation3], 4294967168 }
 0x275   :  { %391 = vsyncpa [#allocation3], 1 }

</bundles_post_ra>
